<compile_context>
chip_gen: v7x
topology: tpu7x:2x2x1
jax: 0.10.0
libtpu: 0.0.40
codegen_flags: <defaults>
</compile_context>

<pallas_src>
import jax
import jax.numpy as jnp
from jax.experimental import pallas as pl
from jax.experimental.pallas import tpu as pltpu


def _round_up(a: int, b: int) -> int:
    return (a + b - 1) // b * b


def _cdiv(a: int, b: int) -> int:
    return (a + b - 1) // b


def _tpu_generation():
    try:
        kind = jax.devices()[0].device_kind.lower()
    except Exception:
        return None
    for gen in ("v7", "v6", "v5", "v4"):
        if gen in kind:
            return gen
    return None


def _default_config(gen):
    """(tm, th, vmem_limit_bytes) per TPU generation (bf16 working sets)."""
    if gen == "v6":
        return 1024, 256, 96 * 1024 * 1024   # 128 MiB physical VMEM
    if gen == "v7":
        return 512, 256, 40 * 1024 * 1024    # 64 MiB physical VMEM per TC
    if gen == "v5":
        return 512, 256, 64 * 1024 * 1024    # default scoped limit is only 16 MiB
    if gen == "v4":
        return 512, 256, 64 * 1024 * 1024
    return 512, 256, None                     # unknown: don't force a limit


def prepare_ffn_weights(w1, w2, w3, *, compute_dtype=jnp.bfloat16, th: int = 256):
    """One-time (weight-load-time) preparation.

    Inputs are PyTorch nn.Linear layout: w1, w3: (hidden_dim, dim);
    w2: (dim, hidden_dim).  Returns (w1p, w2tp, w3p), each (H_pad, D_pad) in
    `compute_dtype`:
      * cast once to the compute dtype (not per forward call),
      * w2 pre-transposed to (hidden, dim) so its H-tiles are contiguous rows,
      * zero-padded to lane-dense sizes (dim -> mult of 128, hidden -> mult of th).
    Zero padding is exact (silu(0) * 0 = 0; padded output columns are sliced off).
    """
    H, D = w1.shape
    assert w3.shape == (H, D) and w2.shape == (D, H)
    th = max(128, _round_up(th, 128))
    D_pad = _round_up(D, 128)
    H_pad = _round_up(H, th)

    def prep(w):
        w = w.astype(compute_dtype)
        if w.shape != (H_pad, D_pad):
            w = jnp.pad(w, ((0, H_pad - w.shape[0]), (0, D_pad - w.shape[1])))
        return w

    return prep(w1), prep(jnp.transpose(w2)), prep(w3)


def _ffn_kernel(x_ref, w1_ref, w3_ref, w2t_ref, o_ref, acc_ref):
    # x_ref   : (tm, D_pad)  activations, resident across the H grid axis
    # w1_ref  : (th, D_pad)  gate-proj weights, PyTorch (out, in) row slice
    # w3_ref  : (th, D_pad)  up-proj weights
    # w2t_ref : (th, D_pad)  down-proj weights, pre-transposed to (H, D)
    # o_ref   : (tm, D_pad)  output tile
    # acc_ref : (tm, D_pad)  f32 accumulator scratch
    h_idx = pl.program_id(1)

    @pl.when(h_idx == 0)
    def _():
        acc_ref[...] = jnp.zeros_like(acc_ref)

    x = x_ref[...]
    # Contract x's last dim with the weights' in_features dim (A @ B^T); the MXU
    # handles the transposed operand directly, accumulation stays in f32.
    dn_nt = (((1,), (1,)), ((), ()))
    h1 = jax.lax.dot_general(x, w1_ref[...], dn_nt, preferred_element_type=jnp.float32)
    h3 = jax.lax.dot_general(x, w3_ref[...], dn_nt, preferred_element_type=jnp.float32)
    # SiLU gating for this H chunk only -> working set stays (tm, th).
    gate = (h1 * jax.nn.sigmoid(h1) * h3).astype(x.dtype)

    # Canonical (M,K) x (K,N): gate (tm, th) x w2t chunk (th, D) -> (tm, D).
    dn_nn = (((1,), (0,)), ((), ()))
    acc_ref[...] += jax.lax.dot_general(
        gate, w2t_ref[...], dn_nn, preferred_element_type=jnp.float32
    )

    @pl.when(h_idx == pl.num_programs(1) - 1)
    def _():
        o_ref[...] = acc_ref[...].astype(o_ref.dtype)


def feed_forward(
    x,
    w1p,
    w2tp,
    w3p,
    *,
    tm: int | None = None,
    th: int | None = None,
    vmem_limit_bytes: int | None = None,
    out_dtype=None,
):
    """SwiGLU FFN: w2(silu(w1(x)) * w3(x)).

    x: (..., dim).  w1p / w2tp / w3p come from prepare_ffn_weights and are all
    (H_pad, D_pad) in the compute dtype (w2 already transposed to (H, D)).
    """
    orig_shape = x.shape
    D = orig_shape[-1]
    H_pad, D_pad = w1p.shape
    assert w3p.shape == (H_pad, D_pad) and w2tp.shape == (H_pad, D_pad)
    assert D <= D_pad and D_pad - D < 128, "weights were prepared for a different dim"

    out_dtype = out_dtype if out_dtype is not None else x.dtype
    compute_dtype = w1p.dtype

    gen = _tpu_generation()
    tm_d, th_d, vmem_d = _default_config(gen)
    tm = tm if tm is not None else tm_d
    th = th if th is not None else th_d
    if vmem_limit_bytes is None:
        vmem_limit_bytes = vmem_d

    xt = x.reshape(-1, D).astype(compute_dtype)
    T = xt.shape[0]

    # Token tile: multiple of the dtype sublane-packing granule, preferably 128.
    sub = max(8, 32 // jnp.dtype(compute_dtype).itemsize)   # 8 f32, 16 bf16, 32 i8
    m_granule = 128 if T >= 128 else sub
    tm_eff = min(tm, _round_up(T, m_granule))
    if gen == "v7" and T > m_granule:
        # Ensure >= 2 token tiles so both v7x TensorCores get work along the
        # "parallel" axis.
        tm_eff = min(tm_eff, _round_up(_cdiv(T, 2), m_granule))
    tm_eff = max(m_granule, _round_up(tm_eff, m_granule))
    T_pad = _round_up(T, tm_eff)

    # Hidden tile: multiple of 128, >= 256 where possible, must divide H_pad.
    th_eff = min(max(128, _round_up(th, 128)), H_pad)
    if H_pad % th_eff != 0:
        th_eff = 256 if H_pad % 256 == 0 else 128

    if (T_pad, D_pad) != xt.shape:
        xt = jnp.pad(xt, ((0, T_pad - T), (0, D_pad - D)))

    grid = (T_pad // tm_eff, H_pad // th_eff)

    compiler_kwargs = dict(dimension_semantics=("parallel", "arbitrary"))
    if vmem_limit_bytes is not None:
        compiler_kwargs["vmem_limit_bytes"] = vmem_limit_bytes

    out = pl.pallas_call(
        _ffn_kernel,
        out_shape=jax.ShapeDtypeStruct((T_pad, D_pad), out_dtype),
        grid_spec=pltpu.PrefetchScalarGridSpec(
            num_scalar_prefetch=0,
            grid=grid,
            in_specs=[
                pl.BlockSpec((tm_eff, D_pad), lambda i, h: (i, 0)),  # x (resident over H)
                pl.BlockSpec((th_eff, D_pad), lambda i, h: (h, 0)),  # w1 chunk (contiguous rows)
                pl.BlockSpec((th_eff, D_pad), lambda i, h: (h, 0)),  # w3 chunk
                pl.BlockSpec((th_eff, D_pad), lambda i, h: (h, 0)),  # w2^T chunk
            ],
            out_specs=pl.BlockSpec((tm_eff, D_pad), lambda i, h: (i, 0)),
            scratch_shapes=[pltpu.VMEM((tm_eff, D_pad), jnp.float32)],
        ),
        compiler_params=pltpu.CompilerParams(**compiler_kwargs),
    )(xt, w1p, w3p, w2tp)

    out = out[:T, :D]
    return out.reshape(orig_shape)


def _ref_ffn(x, w1, w2, w3):
    # Pure-JAX reference of the PyTorch forward (nn.Linear: y = x @ W^T).
    h1 = x @ w1.T
    h3 = x @ w3.T
    return (h1 * jax.nn.sigmoid(h1) * h3) @ w2.T


if __name__ == "__main__":
    key = jax.random.PRNGKey(0)
    k1, k2, k3, k4, k5 = jax.random.split(key, 5)

    # ---- Test 1: default bf16 compute path, non-divisible shapes (exercises
    #      D/H/T padding and the streamed-weight accumulation). -------------
    dim, hidden_dim = 192, 896          # pad to D_pad=256, H_pad=1024
    batch, seq = 2, 13                  # T = 26 (ragged token tile)

    x = jax.random.normal(k1, (batch, seq, dim), dtype=jnp.float32)
    w1 = jax.random.normal(k2, (hidden_dim, dim), dtype=jnp.float32) * 0.05
    w2 = jax.random.normal(k3, (dim, hidden_dim), dtype=jnp.float32) * 0.05
    w3 = jax.random.normal(k4, (hidden_dim, dim), dtype=jnp.float32) * 0.05

    w1p, w2tp, w3p = prepare_ffn_weights(w1, w2, w3)        # bf16, load-time prep
    out = jax.block_until_ready(feed_forward(x, w1p, w2tp, w3p))
    assert out.shape == x.shape and out.dtype == x.dtype

    # bf16-faithful reference (emulate the one-time input rounding).
    def r(a):
        return a.astype(jnp.bfloat16).astype(jnp.float32)

    with jax.default_matmul_precision("highest"):
        h1 = r(x) @ r(w1).T
        h3 = r(x) @ r(w3).T
        ref = r(h1 * jax.nn.sigmoid(h1) * h3) @ r(w2).T
    ref = jax.block_until_ready(ref)
    err = float(jnp.max(jnp.abs(out - ref)))
    assert jnp.allclose(out, ref, atol=1e-2, rtol=1e-2), err

    # ---- Test 2: f32 compute path, lane-dense shapes, multi-chunk H. -------
    dim2, hidden2 = 256, 1024
    x2 = jax.random.normal(k5, (2, 16, dim2), dtype=jnp.float32)
    w1b = jax.random.normal(k2, (hidden2, dim2), dtype=jnp.float32) * 0.05
    w2b = jax.random.normal(k3, (dim2, hidden2), dtype=jnp.float32) * 0.05
    w3b = jax.random.normal(k4, (hidden2, dim2), dtype=jnp.float32) * 0.05

    w1p2, w2tp2, w3p2 = prepare_ffn_weights(w1b, w2b, w3b, compute_dtype=jnp.float32)
    out2 = jax.block_until_ready(feed_forward(x2, w1p2, w2tp2, w3p2))
    with jax.default_matmul_precision("highest"):
        ref2 = jax.block_until_ready(_ref_ffn(x2, w1b, w2b, w3b))
    err2 = float(jnp.max(jnp.abs(out2 - ref2)))
    # f32 matmuls on the MXU use default (bf16-pass) precision -> modest tolerance.
    assert out2.shape == x2.shape
    assert jnp.allclose(out2, ref2, atol=5e-2, rtol=5e-2), err2

    print("KERNEL_OK")
</pallas_src>

<mosaic_0001>
module attributes {stable_mosaic.version = 11 : i64} {
  func.func @_ffn_kernel(%arg0: i32, %arg1: i32, %arg2: memref<32x256xbf16, #tpu.memory_space<vmem>>, %arg3: memref<256x256xbf16, #tpu.memory_space<vmem>>, %arg4: memref<256x256xbf16, #tpu.memory_space<vmem>>, %arg5: memref<256x256xbf16, #tpu.memory_space<vmem>>, %arg6: memref<32x256xf32, #tpu.memory_space<vmem>>, %arg7: memref<32x256xf32, #tpu.memory_space<vmem>>) attributes {dimension_semantics = [#tpu.dimension_semantics<parallel>, #tpu.dimension_semantics<arbitrary>], iteration_bounds = array<i64: 1, 4>, scalar_prefetch = 0 : i64, scratch_operands = 1 : i64, tpu.core_type = #tpu.core_type<tc>, window_params = [{transform_indices = @transform_0, window_bounds = array<i64: 32, 256>}, {transform_indices = @transform_1, window_bounds = array<i64: 256, 256>}, {transform_indices = @transform_2, window_bounds = array<i64: 256, 256>}, {transform_indices = @transform_3, window_bounds = array<i64: 256, 256>}, {transform_indices = @transform_4, window_bounds = array<i64: 32, 256>}]} {
    %c0_i32 = arith.constant 0 : i32
    %0 = arith.cmpi eq, %arg1, %c0_i32 : i32
    %1 = arith.extui %0 : i1 to i32
    %c0_i32_0 = arith.constant 0 : i32
    %2 = arith.cmpi ne, %1, %c0_i32_0 : i32
    scf.if %2 {
      %cst_16 = arith.constant 0.000000e+00 : f32
      %24 = vector.broadcast %cst_16 : f32 to vector<32x256xf32>
      %c0_17 = arith.constant 0 : index
      %c0_18 = arith.constant 0 : index
      %25 = vector.load %arg7[%c0_17, %c0_18] : memref<32x256xf32, #tpu.memory_space<vmem>>, vector<32x256xf32>
      tpu.vector_store %arg7[%c0_17, %c0_18], %24 {strides = array<i32>} : memref<32x256xf32, #tpu.memory_space<vmem>>, vector<32x256xf32>,
    } else {
    }
    %c0 = arith.constant 0 : index
    %c0_1 = arith.constant 0 : index
    %3 = vector.load %arg2[%c0, %c0_1] : memref<32x256xbf16, #tpu.memory_space<vmem>>, vector<32x256xbf16>
    %c0_2 = arith.constant 0 : index
    %c0_3 = arith.constant 0 : index
    %4 = vector.load %arg3[%c0_2, %c0_3] : memref<256x256xbf16, #tpu.memory_space<vmem>>, vector<256x256xbf16>
    %cst = arith.constant dense<0.000000e+00> : vector<32x256xf32>
    %5 = tpu.matmul %3, %4, %cst {dimension_numbers = #tpu.dot_dimension_numbers<[1], [1], [0], [0], [0, 0, 1, 0], [], []>} : vector<32x256xbf16>, vector<256x256xbf16>, vector<32x256xf32> -> vector<32x256xf32>
    %c0_4 = arith.constant 0 : index
    %c0_5 = arith.constant 0 : index
    %6 = vector.load %arg4[%c0_4, %c0_5] : memref<256x256xbf16, #tpu.memory_space<vmem>>, vector<256x256xbf16>
    %cst_6 = arith.constant dense<0.000000e+00> : vector<32x256xf32>
    %7 = tpu.matmul %3, %6, %cst_6 {dimension_numbers = #tpu.dot_dimension_numbers<[1], [1], [0], [0], [0, 0, 1, 0], [], []>} : vector<32x256xbf16>, vector<256x256xbf16>, vector<32x256xf32> -> vector<32x256xf32>
    %8 = arith.negf %5 : vector<32x256xf32>
    %9 = math.exp %8 : vector<32x256xf32>
    %cst_7 = arith.constant 1.000000e+00 : f32
    %10 = vector.broadcast %cst_7 : f32 to vector<32x256xf32>
    %11 = arith.addf %10, %9 : vector<32x256xf32>
    %12 = arith.divf %10, %11 : vector<32x256xf32>
    %13 = arith.mulf %5, %12 : vector<32x256xf32>
    %14 = arith.mulf %13, %7 : vector<32x256xf32>
    %15 = arith.truncf %14 : vector<32x256xf32> to vector<32x256xbf16>
    %c0_8 = arith.constant 0 : index
    %c0_9 = arith.constant 0 : index
    %16 = vector.load %arg7[%c0_8, %c0_9] : memref<32x256xf32, #tpu.memory_space<vmem>>, vector<32x256xf32>
    %c0_10 = arith.constant 0 : index
    %c0_11 = arith.constant 0 : index
    %17 = vector.load %arg5[%c0_10, %c0_11] : memref<256x256xbf16, #tpu.memory_space<vmem>>, vector<256x256xbf16>
    %cst_12 = arith.constant dense<0.000000e+00> : vector<32x256xf32>
    %18 = tpu.matmul %15, %17, %cst_12 {dimension_numbers = #tpu.dot_dimension_numbers<[1], [0], [0], [1], [0, 0, 1, 1], [], []>} : vector<32x256xbf16>, vector<256x256xbf16>, vector<32x256xf32> -> vector<32x256xf32>
    %19 = arith.addf %16, %18 : vector<32x256xf32>
    %c0_13 = arith.constant 0 : index
    %c0_14 = arith.constant 0 : index
    %20 = vector.load %arg7[%c0_13, %c0_14] : memref<32x256xf32, #tpu.memory_space<vmem>>, vector<32x256xf32>
    tpu.vector_store %arg7[%c0_13, %c0_14], %19 {strides = array<i32>} : memref<32x256xf32, #tpu.memory_space<vmem>>, vector<32x256xf32>,
    %c3_i32 = arith.constant 3 : i32
    %21 = arith.cmpi eq, %arg1, %c3_i32 : i32
    %22 = arith.extui %21 : i1 to i32
    %c0_i32_15 = arith.constant 0 : i32
    %23 = arith.cmpi ne, %22, %c0_i32_15 : i32
    scf.if %23 {
      %c0_16 = arith.constant 0 : index
      %c0_17 = arith.constant 0 : index
      %24 = vector.load %arg7[%c0_16, %c0_17] : memref<32x256xf32, #tpu.memory_space<vmem>>, vector<32x256xf32>
      %c0_18 = arith.constant 0 : index
      %c0_19 = arith.constant 0 : index
      %25 = vector.load %arg6[%c0_18, %c0_19] : memref<32x256xf32, #tpu.memory_space<vmem>>, vector<32x256xf32>
      tpu.vector_store %arg6[%c0_18, %c0_19], %24 {strides = array<i32>} : memref<32x256xf32, #tpu.memory_space<vmem>>, vector<32x256xf32>,
    } else {
    }
    return
  }
  func.func @transform_0(%arg0: i32, %arg1: i32) -> (i32, i32) {
    %c0_i32 = arith.constant 0 : i32
    %c0_i32_0 = arith.constant 0 : i32
    return %arg0, %c0_i32 : i32, i32
  }
  func.func @transform_1(%arg0: i32, %arg1: i32) -> (i32, i32) {
    %c0_i32 = arith.constant 0 : i32
    %c0_i32_0 = arith.constant 0 : i32
    return %arg1, %c0_i32 : i32, i32
  }
  func.func @transform_2(%arg0: i32, %arg1: i32) -> (i32, i32) {
    %c0_i32 = arith.constant 0 : i32
    %c0_i32_0 = arith.constant 0 : i32
    return %arg1, %c0_i32 : i32, i32
  }
  func.func @transform_3(%arg0: i32, %arg1: i32) -> (i32, i32) {
    %c0_i32 = arith.constant 0 : i32
    %c0_i32_0 = arith.constant 0 : i32
    return %arg1, %c0_i32 : i32, i32
  }
  func.func @transform_4(%arg0: i32, %arg1: i32) -> (i32, i32) {
    %c0_i32 = arith.constant 0 : i32
    %c0_i32_0 = arith.constant 0 : i32
    return %arg0, %c0_i32 : i32, i32
  }
}

</mosaic_0001>

<bundles_post_ra>
// kernel: tpu_custom_call.1
= control target key start
LH: loop header
LB: loop body
LE: loop exit
PB: predicated region body
PF: predicated region fallthrough
CT: control target
= control target key end

     0   :  { %s2419_s0 = inlined_call_operand.hbm [shape: bf16[32,256], index: 0, kind: input, shape index: {}]   ;;  %s2420_s1 = inlined_call_operand.hbm [shape: bf16[1024,256], index: 1, kind: input, shape index: {}]   ;;  %s2421_s2 = inlined_call_operand.hbm [shape: bf16[1024,256], index: 2, kind: input, shape index: {}]   ;;  %s2422_s3 = inlined_call_operand.hbm [shape: bf16[1024,256], index: 3, kind: input, shape index: {}]   ;;  %s2423_s4 = inlined_call_operand.hbm [shape: f32[32,256], index: 4, kind: output, shape index: {}]  }
   0x1   :  { %2436 = sst [smem:[#allocation16_spill]] %s2420_s1 }
   0x2   :  { %2437 = sst [smem:[#allocation17_spill]] %s2421_s2 }
   0x3   :  { %9 = vsyncpa [#allocation4], 0 }
   0x4   :  { %10 = vsyncpa [#allocation7], 0 }
   0x5   :  { %12 = vsyncpa [#allocation7 + $0x1], 0 }
   0x6   :  { %13 = vsyncpa [#allocation10], 0 }
   0x7   :  { %15 = vsyncpa [#allocation10 + $0x1], 0 }
   0x8   :  { %16 = vsyncpa [#allocation5], 0  ;;  %s2030_s15 = smov 0   ;;  %s2032_s16 = smov 0  }
   0x9   :  { %s2034_s17 = smov 0   ;;  %s2036_s18 = smov 0  }
   0xa   :  { %s2038_s19 = smov 0   ;;  %s2040_s20 = smov 0  }
   0xb LB: > { %s31_s21 = sadd.s32 1, %s1989_s19  ;;  %s67_s22 = sadd.s32 1, %s1981_s17  ;;  %s1993_s20 = sphi %s2040_s20, %s22_s20   ;;  %s1989_s19 = sphi %s2038_s19, %s2460_s19   ;;  %s1985_s18 = sphi %s2036_s18, %s2459_s18   ;;  %s1981_s17 = sphi %s2034_s17, %s2458_s17   ;;  %s1977_s16 = sphi %s2032_s16, %s2457_s16   ;;  %s1973_s15 = sphi %s2030_s15, %s2456_s15  }
   0xc   : > { %p32_p0 = scmp.ge.s32.totalorder %s31_s21, 4  ;;  %p74_p1 = scmp.ne.s32.totalorder %s1981_s17, %s1977_s16 }
   0xd   : > { %p75_p2 = scmp.eq.s32.totalorder %s1993_s20, 0  ;;  %p1546_p5 = scmp.lt.s32.totalorder %s1993_s20, 4 }
   0xe   : > { %s2462_s21 = smov (%p32_p0, %s31_s21), 0  ;;  %s199_s25 = sand.u32 1, %s1993_s20  }
   0xf   : > { %p2067_p3 = por %p75_p2, %p74_p1  ;;  %s64_s24 = ssub.s32 %s1989_s19, %s2462_s21 }
  0x10   : > { %p65_p4 = scmp.eq.s32.totalorder %s64_s24, 0  ;;  %s2424_s26 = sand.u32 1, %s1981_s17  }
  0x11   : > { %s2081_s28 = sshll.u32 %s2424_s26, 8  ;;  %s2084_s29 = sshll.u32 %s1989_s19, 12 }
  0x12   : > { %s2077_s27 = scalar_select %p65_p4, %s1981_s17, %s67_s22  }
  0x13   : > { %s2439_s1 = sld [smem:[#allocation16_spill]]  ;;  %s203_s7 = scalar_lea.vmem [#allocation6], %s2081_s28 }
  0x14   : > { %s211_s8 = sshll.u32 %s203_s7, 4  ;;  %p2097_p6 = pnand %p1546_p5, %p2067_p3  ;;  %s2093_s8 = int_to_ptr.vmem [resolvable:$true] %s211_s8 }
  0x15   : > { %s2101_s10 = scalar_lea.sflag [#allocation7], %s199_s25 }
  0x16   : > { %s2440_s9 = scalar_select %p2097_p6, 1, 0 }
  0x17   : > { %p2107_p8 = pneg %p2097_p6 }
  0x19   : > { %s2090_s6 = scalar_lea.hbm %s2439_s1, %s2084_s29  ;;  %s1792_s22 = scalar_lea.hbm %s2439_s1, 16384 }
  0x1a   : > { %s1787_s11 = scalar_lea.hbm %s2090_s6, 4096  ;;  %p1793_p11 = scmp.lt.u32.totalorder %s2090_s6, %s2439_s1 }
  0x1b   : > { %p1788_p7 = scmp.ne.s32.totalorder %s2090_s6, %s1787_s11  ;;  %p1794_p12 = scmp.lt.u32.totalorder %s1792_s22, %s1787_s11 }
  0x1c   : > { %s2441_s12 = scalar_select %p2107_p8, 1, 0 }
  0x1d   : > { %p1790_p9 = pnand %p2107_p8, %p1788_p7  ;;  %p1795_p13 = por %p1794_p12, %p1793_p11 }
  0x1e   : > { %p1796_p0 = scmp.lt.u32.totalorder %s1787_s11, %s2090_s6 }
  0x1f   : > { %p1791_p10 = pneg %p1790_p9 }
  0x20   : > { %p1797_p1 = por %p1796_p0, %p1795_p13 }
  0x22   : > { %p1798_p2 = pnand %p1797_p1, %p1791_p10 }
  0x24   : > { %1801 = shalt.err (!%p1798_p2)
}
  0x25   : > { %s1802_s25 = scalar_lea.vmem %s2093_s8, 4096  ;;  %s1995_s30 = smov [#allocation6]  }
  0x26   : > { %p1803_p3 = scmp.ne.s32.totalorder %s2093_s8, %s1802_s25  ;;  %s1807_s5 = sshll.u32 %s1995_s30, 4  ;;  %s1808_s5 = int_to_ptr.vmem [resolvable:$false] %s1807_s5 }
  0x27   : > { %s1809_s7 = scalar_lea.vmem %s1808_s5, 8192  ;;  %p1810_p7 = scmp.lt.s32.totalorder %s2093_s8, %s1808_s5 }
  0x28   : > { %p1805_p4 = pnand %p1803_p3, %p2107_p8  ;;  %p1811_p9 = scmp.lt.s32.totalorder %s1809_s7, %s1802_s25 }
  0x2a   : > { %p1806_p5 = pneg %p1805_p4  ;;  %p1812_p11 = por %p1811_p9, %p1810_p7 }
  0x2c   : > { %p1813_p12 = pnand %p1812_p11, %p1806_p5 }
  0x2e   : > { %1816 = shalt.err (!%p1813_p12)
}
  0x2f   : > { %s2425_s11 = smov 128   ;;  %s2427_s13 = smov 8  }
  0x30   : > { %1538 = dma.hbm_to_vmem [thread:$0]  (!%p2097_p6), %s2090_s6, 4096, %s2093_s8, %s2101_s10, %s2425_s11, %s2425_s11, %s2427_s13  }
  0x31   : > { %s2135_s14 = sadd.s32 4294967295, %s1993_s20   ;;  %p80_p10 = scmp.ne.s32.totalorder %s1977_s16, %s1973_s15 }
  0x32   : > { %p2429_p13 = scmp.eq.s32.totalorder %s2135_s14, 0  ;;  %p1345_p0 = scmp.ge.s32.totalorder %s1993_s20, 1 }
  0x33   : > { %p169_p1 = scmp.lt.s32.totalorder %s1993_s20, 5  ;;  %s1998_s6 = smov [#allocation3]  }
  0x34   : > { %p2144_p2 = por %p2429_p13, %p80_p10  ;;  %s185_s8 = sshll.u32 %s1998_s6, 4  ;;  %s2154_s8 = int_to_ptr.vmem [resolvable:$true] %s185_s8 }
  0x35   : > { %p2148_p3 = pnand %p1345_p0, %p169_p1  ;;  %s2444_s2 = sld [smem:[#allocation17_spill]] }
  0x36   : > { %s2442_s22 = scalar_select %p2144_p2, 1, 0 }
  0x37   : > { %s2443_s23 = scalar_select %p2148_p3, 1, 0 }
  0x38   : > { %p1531_p4 = pneg %p2148_p3  ;;  %s225_s30 = scalar_lea.vmem [#allocation8], %s2081_s28 }
  0x39   : > { %s233_s5 = sshll.u32 %s225_s30, 4  ;;  %s2169_s5 = int_to_ptr.vmem [resolvable:$true] %s233_s5 }
  0x3a   : > { %p2165_p5 = pnand %p1531_p4, %p2429_p13 }
  0x3b   : > { %s2160_s25 = scalar_lea.hbm %s2444_s2, %s2084_s29  ;;  %s1822_s26 = scalar_lea.hbm %s2444_s2, 16384 }
  0x3c   : > { %s2445_s7 = scalar_select %p2165_p5, 1, 0 }
  0x3d   : > { %s1817_s6 = scalar_lea.hbm %s2160_s25, 4096  ;;  %p1823_p12 = scmp.lt.u32.totalorder %s2160_s25, %s2444_s2 }
  0x3e   : > { %p1818_p7 = scmp.ne.s32.totalorder %s2160_s25, %s1817_s6  ;;  %p1824_p10 = scmp.lt.u32.totalorder %s1822_s26, %s1817_s6 }
  0x3f   : > { %p1826_p1 = scmp.lt.u32.totalorder %s1817_s6, %s2160_s25 }
  0x40   : > { %p1820_p9 = pnand %p1818_p7, %p2107_p8  ;;  %p1825_p0 = por %p1824_p10, %p1823_p12 }
  0x42   : > { %p1821_p11 = pneg %p1820_p9  ;;  %p1827_p4 = por %p1826_p1, %p1825_p0 }
  0x44   : > { %p1828_p13 = pnand %p1827_p4, %p1821_p11 }
  0x46   : > { %1831 = shalt.err (!%p1828_p13)
}
  0x47   : > { %s1832_s30 = scalar_lea.vmem %s2169_s5, 4096  ;;  %s1999_s15 = smov [#allocation8]  }
  0x48   : > { %p1833_p7 = scmp.ne.s32.totalorder %s2169_s5, %s1832_s30  ;;  %s1837_s24 = sshll.u32 %s1999_s15, 4  ;;  %s1838_s24 = int_to_ptr.vmem [resolvable:$false] %s1837_s24 }
  0x49   : > { %s1839_s11 = scalar_lea.vmem %s1838_s24, 8192  ;;  %p1840_p3 = scmp.lt.s32.totalorder %s2169_s5, %s1838_s24 }
  0x4a   : > { %p1835_p9 = pnand %p1833_p7, %p2107_p8  ;;  %p1841_p5 = scmp.lt.s32.totalorder %s1839_s11, %s1832_s30 }
  0x4c   : > { %p1836_p2 = pneg %p1835_p9  ;;  %p1842_p12 = por %p1841_p5, %p1840_p3 }
  0x4e   : > { %p1843_p10 = pnand %p1842_p12, %p1836_p2 }
  0x50   : > { %1846 = shalt.err (!%p1843_p10)
}
  0x51   : > { %s2446_s26 = smov 8   ;;  %s2447_s13 = smov 128  }
  0x52   : > { %1541 = dma.hbm_to_vmem [thread:$0]  (!%p2097_p6), %s2160_s25, 4096, %s2169_s5, %s2101_s10, %s2447_s13, %s2447_s13, %s2446_s26  }
  0x53   : > { %s1847_s15 = scalar_lea.hbm %s2419_s0, 512  ;;  %p2448_p2 = scmp.ne.s32.totalorder %s2445_s7, 0 }
  0x54   : > { %p1848_p13 = scmp.ne.s32.totalorder %s2419_s0, %s1847_s15  ;;  %p1854_p0 = scmp.lt.u32.totalorder %s1847_s15, %s2419_s0 }
  0x55   : > { %p1849_p3 = pneg %p2448_p2 }
  0x57   : > { %p1850_p5 = pnand %p1849_p3, %p1848_p13 }
  0x59   : > { %p1851_p11 = pneg %p1850_p5 }
  0x5b   : > { %p1856_p1 = pnand %p1854_p0, %p1851_p11 }
  0x5d   : > { %1859 = shalt.err (!%p1856_p1)
}
  0x5e   : > { %s1860_s10 = scalar_lea.vmem %s2154_s8, 512  ;;  %p1868_p12 = scmp.lt.s32.totalorder %s2154_s8, %s2154_s8 }
  0x5f   : > { %p1861_p4 = scmp.ne.s32.totalorder %s2154_s8, %s1860_s10  ;;  %p1869_p10 = scmp.lt.s32.totalorder %s1860_s10, %s1860_s10 }
  0x61   : > { %p1863_p7 = pnand %p1861_p4, %p1849_p3  ;;  %p1870_p6 = por %p1869_p10, %p1868_p12 }
  0x63   : > { %p1864_p9 = pneg %p1863_p7 }
  0x65   : > { %p1871_p8 = pnand %p1870_p6, %p1864_p9 }
  0x67   : > { %1874 = shalt.err (!%p1871_p8)
}
  0x68   : > { %1534 = dma.hbm_to_vmem [thread:$0]  (!%p2448_p2), %s2419_s0, 512, %s2154_s8, [#allocation4], %s2447_s13, %s2447_s13, %s2446_s26  }
  0x69   : > { %s2224_s6 = scalar_lea.hbm %s2422_s3, %s2084_s29  ;;  %s247_s7 = scalar_lea.vmem [#allocation9], %s2081_s28 }
  0x6a   : > { %s255_s15 = sshll.u32 %s247_s7, 4  ;;  %s2449_s24 = sand.u32 1, %s1981_s17   ;;  %s2227_s15 = int_to_ptr.vmem [resolvable:$true] %s255_s15 }
  0x6b   : > { %s2231_s30 = scalar_lea.sflag [#allocation10], %s2449_s24  ;;  %s1875_s11 = scalar_lea.hbm %s2224_s6, 4096 }
  0x6c   : > { %p1876_p6 = scmp.ne.s32.totalorder %s2224_s6, %s1875_s11  ;;  %p2450_p8 = scmp.ne.s32.totalorder %s2441_s12, 0 }
  0x6d   : > { %s1880_s29 = scalar_lea.hbm %s2422_s3, 16384  ;;  %p1881_p3 = scmp.lt.u32.totalorder %s2224_s6, %s2422_s3 }
  0x6e   : > { %p1878_p13 = pnand %p1876_p6, %p2450_p8  ;;  %p1882_p5 = scmp.lt.u32.totalorder %s1880_s29, %s1875_s11 }
  0x6f   : > { %p1884_p0 = scmp.lt.u32.totalorder %s1875_s11, %s2224_s6 }
  0x70   : > { %p1879_p2 = pneg %p1878_p13  ;;  %p1883_p11 = por %p1882_p5, %p1881_p3 }
  0x72   : > { %p1885_p1 = por %p1884_p0, %p1883_p11 }
  0x74   : > { %p1886_p4 = pnand %p1885_p1, %p1879_p2 }
  0x76   : > { %1889 = shalt.err (!%p1886_p4)
}
  0x77   : > { %s1890_s28 = scalar_lea.vmem %s2227_s15, 4096  ;;  %s2000_s25 = smov [#allocation9]  }
  0x78   : > { %p1891_p7 = scmp.ne.s32.totalorder %s2227_s15, %s1890_s28  ;;  %s1895_s5 = sshll.u32 %s2000_s25, 4  ;;  %s1896_s5 = int_to_ptr.vmem [resolvable:$false] %s1895_s5 }
  0x79   : > { %s1897_s7 = scalar_lea.vmem %s1896_s5, 8192  ;;  %p1898_p10 = scmp.lt.s32.totalorder %s2227_s15, %s1896_s5 }
  0x7a   : > { %p1893_p9 = pnand %p1891_p7, %p2450_p8  ;;  %p1899_p6 = scmp.lt.s32.totalorder %s1897_s7, %s1890_s28 }
  0x7c   : > { %p1894_p12 = pneg %p1893_p9  ;;  %p1900_p13 = por %p1899_p6, %p1898_p10 }
  0x7e   : > { %p1901_p3 = pnand %p1900_p13, %p1894_p12 }
  0x80   : > { %1904 = shalt.err (!%p1901_p3)
}
  0x81   : > { %p2451_p2 = scmp.ne.s32.totalorder %s2440_s9, 0  ;;  %p2452_p8 = scmp.ne.s32.totalorder %s2443_s23, 0 }
  0x82   : > { %p2453_p5 = scmp.eq.s32.totalorder (!%p2452_p8), %s2135_s14, 0 }
  0x83   : > { %1544 = dma.hbm_to_vmem [thread:$0]  (!%p2451_p2), %s2224_s6, 4096, %s2227_s15, %s2231_s30, %s2447_s13, %s2447_s13, %s2446_s26  }
  0x84   : > { %267 = sbr.rel (%p2452_p8) target bundleno = 794 (0x31a), region = 36 }
  0x8b   : > { %1956 = dma.done.wait (%p2453_p5), [#allocation4], 512   ;;  %p2454_p11 = pmov %p2453_p5 }
  0x8c   : > { %s273_s9 = sand.u32 1, %s2135_s14   ;;  %s275_s12 = sand.u32 1, %s1977_s16  }
  0x8d   : > { %1958 = vsyncadd (%p2454_p11), [#allocation4], 4294966784  ;;  %s1362_s24 = sshll.u32 %s275_s12, 8  ;;  %s274_s11 = scalar_lea.sflag [#allocation7], %s273_s9 }
  0x8e   : > { %s2266_s8 = scalar_lea.vmem [#allocation6], %s1362_s24  ;;  %p2455_p0 = scmp.ne.s32.totalorder %s2442_s22, 0 }
  0x90   : > { %1960 = dma.done.wait (%p2455_p0), %s274_s11, 8192  }
  0x91   : > { %1962 = vsyncadd (%p2455_p0), %s274_s11, 4294959104  ;;  %s2272_s23 = scalar_lea.vmem [#allocation8], %s1362_s24  ;;  %s292_s26 = scalar_lea.sflag [#allocation10], %s275_s12 }
  0x92   : > { %s2274_s13 = scalar_lea.vmem [#allocation9], %s1362_s24 }
  0x93   : > { %1964 = dma.done.wait (%p2455_p0), %s292_s26, 4096  }
  0x94   : > { %1966 = vsyncadd (%p2455_p0), %s292_s26, 4294963200  ;;  %p1365_p1 = scmp.ne.s32.totalorder %s1985_s18, 0 }
  0x95   : > { %v2001_v0 = vmov (!%p1365_p1), 0.0  }
  0x96   : > { %333 = sbr.rel (%p1365_p1) target bundleno = 157 (0x9d), region = 56  ;;  %334 = vst [vmem:[#allocation2] sm:$0xff] (!%p1365_p1), %v2001_v0  ;;  %335 = vst [vmem:[#allocation2 + $0x8] sm:$0xff] (!%p1365_p1), %v2001_v0 }
  0x97   : > { %336 = vst [vmem:[#allocation2 + $0x10] sm:$0xff] (!%p1365_p1), %v2001_v0  ;;  %337 = vst [vmem:[#allocation2 + $0x18] sm:$0xff] (!%p1365_p1), %v2001_v0 }
  0x98   : > { %338 = vst [vmem:[#allocation2 + $0x20] sm:$0xff] (!%p1365_p1), %v2001_v0  ;;  %339 = vst [vmem:[#allocation2 + $0x28] sm:$0xff] (!%p1365_p1), %v2001_v0 }
  0x99   : > { %340 = vst [vmem:[#allocation2 + $0x30] sm:$0xff] (!%p1365_p1), %v2001_v0  ;;  %341 = vst [vmem:[#allocation2 + $0x38] sm:$0xff] (!%p1365_p1), %v2001_v0 }
  0x9d PF: > { %v1605_v1 = vld [vmem:[%s2266_s8 + $0x4] ss:$8 sps:$4 sm:$0xff]   ;;  %v1607_v2 = vld [vmem:[%s2266_s8] ss:$8 sps:$4 sm:$0xff]   ;;  %v1608_v3 = vld [vmem:[%s2266_s8 + $0x14] ss:$8 sps:$4 sm:$0xff]  }
  0x9e   : > { %558 = vmatprep.subr.bf16.mxu0 %v1605_v1  ;;  %v1617_v4 = vld [vmem:[%s2272_s23 + $0x4] ss:$8 sps:$4 sm:$0xff]   ;;  %v1619_v5 = vld [vmem:[%s2272_s23] ss:$8 sps:$4 sm:$0xff]   ;;  %v1610_v6 = vld [vmem:[%s2266_s8 + $0x10] ss:$8 sps:$4 sm:$0xff]  }
  0x9f   : > { %559 = vmatpush1.bf16.xpose.msra.mxu0 %v1607_v2  ;;  %v1611_v7 = vld [vmem:[%s2266_s8 + $0x24] ss:$8 sps:$4 sm:$0xff]   ;;  %803 = vmatprep.subr.bf16.mxu1 %v1617_v4  ;;  %v1623_v8 = vld [vmem:[%s2272_s23 + $0x14] ss:$8 sps:$4 sm:$0xff]   ;;  %v1625_v9 = vld [vmem:[%s2272_s23 + $0x10] ss:$8 sps:$4 sm:$0xff]  }
  0xa0   : > { %560 = vmatprep.subr.bf16.mxu0 %v1608_v3  ;;  %804 = vmatpush1.bf16.xpose.msra.mxu1 %v1619_v5  ;;  %v1629_v10 = vld [vmem:[%s2272_s23 + $0x24] ss:$8 sps:$4 sm:$0xff]   ;;  %v1613_v11 = vld [vmem:[%s2266_s8 + $0x20] ss:$8 sps:$4 sm:$0xff]   ;;  %v1614_v12 = vld [vmem:[%s2266_s8 + $0x34] ss:$8 sps:$4 sm:$0xff]  }
  0xa1   : > { %805 = vmatprep.subr.bf16.mxu1 %v1623_v8  ;;  %v1631_v13 = vld [vmem:[%s2272_s23 + $0x20] ss:$8 sps:$4 sm:$0xff]   ;;  %v1635_v14 = vld [vmem:[%s2272_s23 + $0x34] ss:$8 sps:$4 sm:$0xff]   ;;  %v1616_v15 = vld [vmem:[%s2266_s8 + $0x30] ss:$8 sps:$4 sm:$0xff]  }
  0xa2   : > { %v1620_v16 = vld [vmem:[%s2266_s8 + $0x44] ss:$8 sps:$4 sm:$0xff]   ;;  %v1637_v17 = vld [vmem:[%s2272_s23 + $0x30] ss:$8 sps:$4 sm:$0xff]   ;;  %v1622_v19 = vld [vmem:[%s2266_s8 + $0x40] ss:$8 sps:$4 sm:$0xff]  }
  0xa3   : > { %v1641_v18 = vld [vmem:[%s2272_s23 + $0x44] ss:$8 sps:$4 sm:$0xff]   ;;  %v1626_v20 = vld [vmem:[%s2266_s8 + $0x54] ss:$8 sps:$4 sm:$0xff]   ;;  %v1643_v21 = vld [vmem:[%s2272_s23 + $0x40] ss:$8 sps:$4 sm:$0xff]  }
  0xa4   : > { %v1647_v22 = vld [vmem:[%s2272_s23 + $0x54] ss:$8 sps:$4 sm:$0xff]   ;;  %v1628_v23 = vld [vmem:[%s2266_s8 + $0x50] ss:$8 sps:$4 sm:$0xff]   ;;  %v1694_v24 = vld [vmem:[#allocation3 + $0x4] ss:$8 sps:$4 sm:$0xff]  }
  0xa5   : > { %v1632_v25 = vld [vmem:[%s2266_s8 + $0x64] ss:$8 sps:$4 sm:$0xff]   ;;  %590 = vmatprep.mubr.bf16.mxu0 %v1694_v24  ;;  %835 = vmatprep.mubr.bf16.mxu1 %v1694_v24  ;;  %v1649_v26 = vld [vmem:[%s2272_s23 + $0x50] ss:$8 sps:$4 sm:$0xff]   ;;  %v1634_v28 = vld [vmem:[%s2266_s8 + $0x60] ss:$8 sps:$4 sm:$0xff]  }
  0xa6   : > { %v1653_v27 = vld [vmem:[%s2272_s23 + $0x64] ss:$8 sps:$4 sm:$0xff]   ;;  %v1638_v29 = vld [vmem:[%s2266_s8 + $0x74] ss:$8 sps:$4 sm:$0xff]   ;;  %v1640_v30 = vld [vmem:[%s2266_s8 + $0x70] ss:$8 sps:$4 sm:$0xff]  }
  0xa7   : > { %561 = vmatpush1.bf16.xpose.msra.mxu0 %v1610_v6  ;;  %v1655_v31 = vld [vmem:[%s2272_s23 + $0x60] ss:$8 sps:$4 sm:$0xff]   ;;  %v1644_v32 = vld [vmem:[%s2266_s8 + $0x84] ss:$8 sps:$4 sm:$0xff]   ;;  %v1659_v33 = vld [vmem:[%s2272_s23 + $0x74] ss:$8 sps:$4 sm:$0xff]  }
  0xa8   : > { %562 = vmatprep.subr.bf16.mxu0 %v1611_v7  ;;  %806 = vmatpush1.bf16.xpose.msra.mxu1 %v1625_v9  ;;  %v1661_v34 = vld [vmem:[%s2272_s23 + $0x70] ss:$8 sps:$4 sm:$0xff]   ;;  %v1665_v35 = vld [vmem:[%s2272_s23 + $0x84] ss:$8 sps:$4 sm:$0xff]   ;;  %v1646_v36 = vld [vmem:[%s2266_s8 + $0x80] ss:$8 sps:$4 sm:$0xff]  }
  0xa9   : > { %807 = vmatprep.subr.bf16.mxu1 %v1629_v10  ;;  %v1650_v37 = vld [vmem:[%s2266_s8 + $0x94] ss:$8 sps:$4 sm:$0xff]   ;;  %v1667_v38 = vld [vmem:[%s2272_s23 + $0x80] ss:$8 sps:$4 sm:$0xff]   ;;  %v1652_v40 = vld [vmem:[%s2266_s8 + $0x90] ss:$8 sps:$4 sm:$0xff]  }
  0xaa   : > { %v1671_v39 = vld [vmem:[%s2272_s23 + $0x94] ss:$8 sps:$4 sm:$0xff]   ;;  %v1656_v41 = vld [vmem:[%s2266_s8 + $0xa4] ss:$8 sps:$4 sm:$0xff]   ;;  %v1673_v42 = vld [vmem:[%s2272_s23 + $0x90] ss:$8 sps:$4 sm:$0xff]  }
  0xab   : > { %v1677_v43 = vld [vmem:[%s2272_s23 + $0xa4] ss:$8 sps:$4 sm:$0xff]   ;;  %v1658_v44 = vld [vmem:[%s2266_s8 + $0xa0] ss:$8 sps:$4 sm:$0xff]   ;;  %v1662_v45 = vld [vmem:[%s2266_s8 + $0xb4] ss:$8 sps:$4 sm:$0xff]  }
  0xac   : > { %v1679_v46 = vld [vmem:[%s2272_s23 + $0xa0] ss:$8 sps:$4 sm:$0xff]   ;;  %v1683_v47 = vld [vmem:[%s2272_s23 + $0xb4] ss:$8 sps:$4 sm:$0xff]   ;;  %v1664_v48 = vld [vmem:[%s2266_s8 + $0xb0] ss:$8 sps:$4 sm:$0xff]  }
  0xad   : > { %v1668_v49 = vld [vmem:[%s2266_s8 + $0xc4] ss:$8 sps:$4 sm:$0xff]   ;;  %v1685_v50 = vld [vmem:[%s2272_s23 + $0xb0] ss:$8 sps:$4 sm:$0xff]   ;;  %v1670_v52 = vld [vmem:[%s2266_s8 + $0xc0] ss:$8 sps:$4 sm:$0xff]  }
  0xae   : > { %v1689_v51 = vld [vmem:[%s2272_s23 + $0xc4] ss:$8 sps:$4 sm:$0xff]   ;;  %v1674_v53 = vld [vmem:[%s2266_s8 + $0xd4] ss:$8 sps:$4 sm:$0xff]   ;;  %v1691_v54 = vld [vmem:[%s2272_s23 + $0xc0] ss:$8 sps:$4 sm:$0xff]  }
  0xaf   : > { %563 = vmatpush1.bf16.xpose.msra.mxu0 %v1613_v11  ;;  %v1695_v55 = vld [vmem:[%s2272_s23 + $0xd4] ss:$8 sps:$4 sm:$0xff]   ;;  %v1676_v56 = vld [vmem:[%s2266_s8 + $0xd0] ss:$8 sps:$4 sm:$0xff]   ;;  %v1680_v57 = vld [vmem:[%s2266_s8 + $0xe4] ss:$8 sps:$4 sm:$0xff]  }
  0xb0   : > { %564 = vmatprep.subr.bf16.mxu0 %v1614_v12  ;;  %808 = vmatpush1.bf16.xpose.msra.mxu1 %v1631_v13  ;;  %v1697_v58 = vld [vmem:[%s2272_s23 + $0xd0] ss:$8 sps:$4 sm:$0xff]   ;;  %v1701_v59 = vld [vmem:[%s2272_s23 + $0xe4] ss:$8 sps:$4 sm:$0xff]   ;;  %v1682_v60 = vld [vmem:[%s2266_s8 + $0xe0] ss:$8 sps:$4 sm:$0xff]  }
  0xb1   : > { %809 = vmatprep.subr.bf16.mxu1 %v1635_v14  ;;  %v1686_v61 = vld [vmem:[%s2266_s8 + $0xf4] ss:$8 sps:$4 sm:$0xff]   ;;  %v1703_v62 = vld [vmem:[%s2272_s23 + $0xe0] ss:$8 sps:$4 sm:$0xff]   ;;  %v1688_v0 = vld [vmem:[%s2266_s8 + $0xf0] ss:$8 sps:$4 sm:$0xff]  }
  0xb2   : > { %v1704_v63 = vld [vmem:[%s2272_s23 + $0xf4] ss:$8 sps:$4 sm:$0xff]   ;;  %v1709_v1 = vld [vmem:[%s2274_s13 + $0x4] ss:$8 sps:$4 sm:$0xff]   ;;  %v1706_v2 = vld [vmem:[%s2272_s23 + $0xf0] ss:$8 sps:$4 sm:$0xff]  }
  0xb3   : > { %v1692_v3 = vld [vmem:[#allocation3] ss:$8 sps:$4 sm:$0xff]   ;;  %v1698_v4 = vld [vmem:[#allocation3 + $0x14] ss:$8 sps:$4 sm:$0xff]   ;;  %v1710_v7 = vld [vmem:[%s2274_s13 + $0x10] ss:$8 sps:$4 sm:$0xff]  }
  0xb4   : > { %v1707_v5 = vld [vmem:[%s2274_s13] ss:$8 sps:$4 sm:$0xff]   ;;  %v1712_v6 = vld [vmem:[%s2274_s13 + $0x14] ss:$8 sps:$4 sm:$0xff]   ;;  %v1715_v8 = vld [vmem:[%s2274_s13 + $0x24] ss:$8 sps:$4 sm:$0xff]  }
  0xb5   : > { %v1700_v9 = vld [vmem:[#allocation3 + $0x10] ss:$8 sps:$4 sm:$0xff]   ;;  %v1713_v10 = vld [vmem:[%s2274_s13 + $0x20] ss:$8 sps:$4 sm:$0xff]   ;;  %v1718_v11 = vld [vmem:[%s2274_s13 + $0x34] ss:$8 sps:$4 sm:$0xff]  }
  0xb6   : > { %v1716_v12 = vld [vmem:[%s2274_s13 + $0x30] ss:$8 sps:$4 sm:$0xff]   ;;  %v1721_v13 = vld [vmem:[%s2274_s13 + $0x44] ss:$8 sps:$4 sm:$0xff]   ;;  %v1719_v14 = vld [vmem:[%s2274_s13 + $0x40] ss:$8 sps:$4 sm:$0xff]  }
  0xb7   : > { %565 = vmatpush1.bf16.xpose.msra.mxu0 %v1616_v15  ;;  %v1724_v15 = vld [vmem:[%s2274_s13 + $0x54] ss:$8 sps:$4 sm:$0xff]   ;;  %v1734_v24 = vld [vmem:[%s2274_s13 + $0x90] ss:$8 sps:$4 sm:$0xff]   ;;  %p1474_p4 = scmp.ne.s32.totalorder %s1985_s18, 3 }
  0xb8   : > { %566 = vmatprep.subr.bf16.mxu0 %v1620_v16  ;;  %810 = vmatpush1.bf16.xpose.msra.mxu1 %v1637_v17  ;;  %v1722_v16 = vld [vmem:[%s2274_s13 + $0x50] ss:$8 sps:$4 sm:$0xff]   ;;  %v1727_v17 = vld [vmem:[%s2274_s13 + $0x64] ss:$8 sps:$4 sm:$0xff]  }
  0xb9   : > { %811 = vmatprep.subr.bf16.mxu1 %v1641_v18  ;;  %v1725_v18 = vld [vmem:[%s2274_s13 + $0x60] ss:$8 sps:$4 sm:$0xff]  }
  0xbf   : > { %567 = vmatpush1.bf16.xpose.msra.mxu0 %v1622_v19  ;;  %v1730_v19 = vld [vmem:[%s2274_s13 + $0x74] ss:$8 sps:$4 sm:$0xff]  }
  0xc0   : > { %568 = vmatprep.subr.bf16.mxu0 %v1626_v20  ;;  %812 = vmatpush1.bf16.xpose.msra.mxu1 %v1643_v21  ;;  %v1728_v20 = vld [vmem:[%s2274_s13 + $0x70] ss:$8 sps:$4 sm:$0xff]   ;;  %v1733_v21 = vld [vmem:[%s2274_s13 + $0x84] ss:$8 sps:$4 sm:$0xff]  }
  0xc1   : > { %813 = vmatprep.subr.bf16.mxu1 %v1647_v22  ;;  %v1731_v22 = vld [vmem:[%s2274_s13 + $0x80] ss:$8 sps:$4 sm:$0xff]  }
  0xc7   : > { %569 = vmatpush1.bf16.xpose.msra.mxu0 %v1628_v23  ;;  %v1736_v23 = vld [vmem:[%s2274_s13 + $0x94] ss:$8 sps:$4 sm:$0xff]  }
  0xc8   : > { %570 = vmatprep.subr.bf16.mxu0 %v1632_v25  ;;  %814 = vmatpush1.bf16.xpose.msra.mxu1 %v1649_v26  ;;  %v1739_v25 = vld [vmem:[%s2274_s13 + $0xa4] ss:$8 sps:$4 sm:$0xff]   ;;  %v1737_v26 = vld [vmem:[%s2274_s13 + $0xa0] ss:$8 sps:$4 sm:$0xff]  }
  0xc9   : > { %815 = vmatprep.subr.bf16.mxu1 %v1653_v27  ;;  %v1742_v27 = vld [vmem:[%s2274_s13 + $0xb4] ss:$8 sps:$4 sm:$0xff]  }
  0xcf   : > { %571 = vmatpush1.bf16.xpose.msra.mxu0 %v1634_v28  ;;  %v1740_v28 = vld [vmem:[%s2274_s13 + $0xb0] ss:$8 sps:$4 sm:$0xff]  }
  0xd0   : > { %572 = vmatprep.subr.bf16.mxu0 %v1638_v29  ;;  %816 = vmatpush1.bf16.xpose.msra.mxu1 %v1655_v31  ;;  %v1745_v29 = vld [vmem:[%s2274_s13 + $0xc4] ss:$8 sps:$4 sm:$0xff]   ;;  %v1748_v31 = vld [vmem:[%s2274_s13 + $0xd4] ss:$8 sps:$4 sm:$0xff]  }
  0xd1   : > { %817 = vmatprep.subr.bf16.mxu1 %v1659_v33  ;;  %v1751_v33 = vld [vmem:[%s2274_s13 + $0xe4] ss:$8 sps:$4 sm:$0xff]  }
  0xd7   : > { %573 = vmatpush1.bf16.xpose.msra.mxu0 %v1640_v30  ;;  %v1743_v30 = vld [vmem:[%s2274_s13 + $0xc0] ss:$8 sps:$4 sm:$0xff]  }
  0xd8   : > { %574 = vmatprep.subr.bf16.mxu0 %v1644_v32  ;;  %818 = vmatpush1.bf16.xpose.msra.mxu1 %v1661_v34  ;;  %v1746_v32 = vld [vmem:[%s2274_s13 + $0xd0] ss:$8 sps:$4 sm:$0xff]   ;;  %v1749_v34 = vld [vmem:[%s2274_s13 + $0xe0] ss:$8 sps:$4 sm:$0xff]  }
  0xd9   : > { %819 = vmatprep.subr.bf16.mxu1 %v1665_v35  ;;  %v1754_v35 = vld [vmem:[%s2274_s13 + $0xf4] ss:$8 sps:$4 sm:$0xff]  }
  0xdf   : > { %575 = vmatpush1.bf16.xpose.msra.mxu0 %v1646_v36  ;;  %v1752_v36 = vld [vmem:[%s2274_s13 + $0xf0] ss:$8 sps:$4 sm:$0xff]  }
  0xe0   : > { %576 = vmatprep.subr.bf16.mxu0 %v1650_v37  ;;  %820 = vmatpush1.bf16.xpose.msra.mxu1 %v1667_v38 }
  0xe1   : > { %821 = vmatprep.subr.bf16.mxu1 %v1671_v39 }
  0xe7   : > { %577 = vmatpush1.bf16.xpose.msra.mxu0 %v1652_v40 }
  0xe8   : > { %578 = vmatprep.subr.bf16.mxu0 %v1656_v41  ;;  %822 = vmatpush1.bf16.xpose.msra.mxu1 %v1673_v42 }
  0xe9   : > { %823 = vmatprep.subr.bf16.mxu1 %v1677_v43 }
  0xef   : > { %579 = vmatpush1.bf16.xpose.msra.mxu0 %v1658_v44 }
  0xf0   : > { %580 = vmatprep.subr.bf16.mxu0 %v1662_v45  ;;  %824 = vmatpush1.bf16.xpose.msra.mxu1 %v1679_v46 }
  0xf1   : > { %825 = vmatprep.subr.bf16.mxu1 %v1683_v47 }
  0xf7   : > { %581 = vmatpush1.bf16.xpose.msra.mxu0 %v1664_v48 }
  0xf8   : > { %582 = vmatprep.subr.bf16.mxu0 %v1668_v49  ;;  %826 = vmatpush1.bf16.xpose.msra.mxu1 %v1685_v50 }
  0xf9   : > { %827 = vmatprep.subr.bf16.mxu1 %v1689_v51 }
  0xff   : > { %583 = vmatpush1.bf16.xpose.msra.mxu0 %v1670_v52 }
 0x100   : > { %584 = vmatprep.subr.bf16.mxu0 %v1674_v53  ;;  %828 = vmatpush1.bf16.xpose.msra.mxu1 %v1691_v54 }
 0x101   : > { %829 = vmatprep.subr.bf16.mxu1 %v1695_v55 }
 0x107   : > { %585 = vmatpush1.bf16.xpose.msra.mxu0 %v1676_v56 }
 0x108   : > { %586 = vmatprep.subr.bf16.mxu0 %v1680_v57  ;;  %830 = vmatpush1.bf16.xpose.msra.mxu1 %v1697_v58 }
 0x109   : > { %831 = vmatprep.subr.bf16.mxu1 %v1701_v59 }
 0x10f   : > { %587 = vmatpush1.bf16.xpose.msra.mxu0 %v1682_v60 }
 0x110   : > { %588 = vmatprep.subr.bf16.mxu0 %v1686_v61  ;;  %832 = vmatpush1.bf16.xpose.msra.mxu1 %v1703_v62 }
 0x111   : > { %833 = vmatprep.subr.bf16.mxu1 %v1704_v63 }
 0x117   : > { %589 = vmatpush1.bf16.xpose.msra.mxu0 %v1688_v0 }
 0x118   : > { %1124 = vmatprep.subr.bf16.mxu0 %v1709_v1  ;;  %834 = vmatpush1.bf16.xpose.msra.mxu1 %v1706_v2 }
 0x119   : > { %1485 = vmatprep.subr.bf16.mxu1 %v1709_v1 }
 0x11e   : > { %591 = vmatmul.mubr.bf16.vlgmr.msra.gmra.mrb[0].mxu0 %v1692_v3 }
 0x11f   : > { %600 = vmatprep.mubr.bf16.mxu0 %v1698_v4  ;;  %1125 = vmatpush1.bf16.msra.mxu0 %v1707_v5 }
 0x120   : > { %1126 = vmatprep.subr.bf16.mxu0 %v1712_v6  ;;  %836 = vmatmul.mubr.bf16.vlgmr.msra.gmra.mrb[0].mxu1 %v1692_v3 }
 0x121   : > { %845 = vmatprep.mubr.bf16.mxu1 %v1698_v4  ;;  %1501 = vmatpush1.bf16.msra.mxu1 %v1707_v5 }
 0x122   : > { %1486 = vmatprep.subr.bf16.mxu1 %v1712_v6 }
 0x123   : > { %1127 = vmatpush1.bf16.msra.mxu0 %v1710_v7 }
 0x124   : > { %1128 = vmatprep.subr.bf16.mxu0 %v1715_v8 }
 0x125   : > { %1502 = vmatpush1.bf16.msra.mxu1 %v1710_v7 }
 0x126   : > { %601 = vmatmul.mubr.bf16.gmra.mrb[4].mxu0 %v1700_v9  ;;  %1487 = vmatprep.subr.bf16.mxu1 %v1715_v8 }
 0x127   : > { %1129 = vmatpush1.bf16.msra.mxu0 %v1713_v10 }
 0x128   : > { %1130 = vmatprep.subr.bf16.mxu0 %v1718_v11  ;;  %846 = vmatmul.mubr.bf16.gmra.mrb[4].mxu1 %v1700_v9 }
 0x129   : > { %1503 = vmatpush1.bf16.msra.mxu1 %v1713_v10 }
 0x12a   : > { %1488 = vmatprep.subr.bf16.mxu1 %v1718_v11 }
 0x12b   : > { %1131 = vmatpush1.bf16.msra.mxu0 %v1716_v12 }
 0x12c   : > { %1132 = vmatprep.subr.bf16.mxu0 %v1721_v13 }
 0x12d   : > { %1504 = vmatpush1.bf16.msra.mxu1 %v1716_v12 }
 0x12e   : > { %1489 = vmatprep.subr.bf16.mxu1 %v1721_v13 }
 0x12f   : > { %1133 = vmatpush1.bf16.msra.mxu0 %v1719_v14 }
 0x130   : > { %1134 = vmatprep.subr.bf16.mxu0 %v1724_v15 }
 0x131   : > { %1505 = vmatpush1.bf16.msra.mxu1 %v1719_v14 }
 0x132   : > { %1490 = vmatprep.subr.bf16.mxu1 %v1724_v15 }
 0x133   : > { %1135 = vmatpush1.bf16.msra.mxu0 %v1722_v16 }
 0x134   : > { %1136 = vmatprep.subr.bf16.mxu0 %v1727_v17 }
 0x135   : > { %1506 = vmatpush1.bf16.msra.mxu1 %v1722_v16 }
 0x136   : > { %1491 = vmatprep.subr.bf16.mxu1 %v1727_v17 }
 0x137   : > { %1137 = vmatpush1.bf16.msra.mxu0 %v1725_v18 }
 0x138   : > { %1138 = vmatprep.subr.bf16.mxu0 %v1730_v19 }
 0x139   : > { %1507 = vmatpush1.bf16.msra.mxu1 %v1725_v18 }
 0x13a   : > { %1492 = vmatprep.subr.bf16.mxu1 %v1730_v19 }
 0x13b   : > { %1139 = vmatpush1.bf16.msra.mxu0 %v1728_v20 }
 0x13c   : > { %1140 = vmatprep.subr.bf16.mxu0 %v1733_v21 }
 0x13d   : > { %1508 = vmatpush1.bf16.msra.mxu1 %v1728_v20 }
 0x13e   : > { %1493 = vmatprep.subr.bf16.mxu1 %v1733_v21 }
 0x13f   : > { %1141 = vmatpush1.bf16.msra.mxu0 %v1731_v22 }
 0x140   : > { %1142 = vmatprep.subr.bf16.mxu0 %v1736_v23 }
 0x141   : > { %1509 = vmatpush1.bf16.msra.mxu1 %v1731_v22 }
 0x142   : > { %1494 = vmatprep.subr.bf16.mxu1 %v1736_v23 }
 0x143   : > { %1143 = vmatpush1.bf16.msra.mxu0 %v1734_v24 }
 0x144   : > { %1144 = vmatprep.subr.bf16.mxu0 %v1739_v25 }
 0x145   : > { %1510 = vmatpush1.bf16.msra.mxu1 %v1734_v24 }
 0x146   : > { %1495 = vmatprep.subr.bf16.mxu1 %v1739_v25 }
 0x147   : > { %1145 = vmatpush1.bf16.msra.mxu0 %v1737_v26 }
 0x148   : > { %1146 = vmatprep.subr.bf16.mxu0 %v1742_v27 }
 0x149   : > { %1511 = vmatpush1.bf16.msra.mxu1 %v1737_v26 }
 0x14a   : > { %1496 = vmatprep.subr.bf16.mxu1 %v1742_v27 }
 0x14b   : > { %1147 = vmatpush1.bf16.msra.mxu0 %v1740_v28 }
 0x14c   : > { %1148 = vmatprep.subr.bf16.mxu0 %v1745_v29 }
 0x14d   : > { %1512 = vmatpush1.bf16.msra.mxu1 %v1740_v28 }
 0x14e   : > { %1497 = vmatprep.subr.bf16.mxu1 %v1745_v29 }
 0x14f   : > { %1149 = vmatpush1.bf16.msra.mxu0 %v1743_v30 }
 0x150   : > { %1150 = vmatprep.subr.bf16.mxu0 %v1748_v31 }
 0x151   : > { %1513 = vmatpush1.bf16.msra.mxu1 %v1743_v30 }
 0x152   : > { %1498 = vmatprep.subr.bf16.mxu1 %v1748_v31 }
 0x153   : > { %1151 = vmatpush1.bf16.msra.mxu0 %v1746_v32 }
 0x154   : > { %1152 = vmatprep.subr.bf16.mxu0 %v1751_v33 }
 0x155   : > { %1514 = vmatpush1.bf16.msra.mxu1 %v1746_v32 }
 0x156   : > { %1499 = vmatprep.subr.bf16.mxu1 %v1751_v33 }
 0x157   : > { %1153 = vmatpush1.bf16.msra.mxu0 %v1749_v34 }
 0x158   : > { %1154 = vmatprep.subr.bf16.mxu0 %v1754_v35 }
 0x159   : > { %1515 = vmatpush1.bf16.msra.mxu1 %v1749_v34 }
 0x15a   : > { %1500 = vmatprep.subr.bf16.mxu1 %v1754_v35 }
 0x15b   : > { %1155 = vmatpush1.bf16.msra.mxu0 %v1752_v36 }
 0x15d   : > { %1516 = vmatpush1.bf16.msra.mxu1 %v1752_v36 }
 0x1f1   : > { %v592_v37 = vpop.f32.mrb[0].mxu0 }
 0x1f2   : > { %v1434_v38 = vmul.f32 -1.442695, %v592_v37  ;;  %v594_v39 = vpop.f32.mrb[1].mxu0 }
 0x1f3   : > { %v1435_v40 = vmul.f32 -1.442695, %v594_v39  ;;  %v596_v41 = vpop.f32.mrb[2].mxu0  ;;  %v837_v45 = vpop.f32.mrb[0].mxu1 }
 0x1f4   : > { %1755 = vpow2.f32 %v1434_v38  ;;  %v1436_v42 = vmul.f32 -1.442695, %v596_v41  ;;  %v598_v43 = vpop.f32.mrb[3].mxu0  ;;  %v839_v46 = vpop.f32.mrb[1].mxu1 }
 0x1f5   : > { %1757 = vpow2.f32 %v1435_v40  ;;  %v1437_v44 = vmul.f32 -1.442695, %v598_v43  ;;  %v841_v48 = vpop.f32.mrb[2].mxu1 }
 0x1f6   : > { %1759 = vpow2.f32 %v1436_v42  ;;  %v843_v51 = vpop.f32.mrb[3].mxu1  ;;  %v925_v42 = vld [vmem:[#allocation2 + $0x8] sm:$0xff] }
 0x1f7   : > { %1761 = vpow2.f32 %v1437_v44  ;;  %v926_v44 = vld [vmem:[#allocation2 + $0x10] sm:$0xff] }
 0x1f9   : > { %v602_v47 = vpop.f32.mrb[4].mxu0 }
 0x1fa   : > { %v1438_v49 = vmul.f32 -1.442695, %v602_v47  ;;  %v604_v50 = vpop.f32.mrb[5].mxu0 }
 0x1fb   : > { %v1439_v52 = vmul.f32 -1.442695, %v604_v50  ;;  %v606_v53 = vpop.f32.mrb[6].mxu0  ;;  %v847_v60 = vpop.f32.mrb[4].mxu1 }
 0x1fc   : > { %1763 = vpow2.f32 %v1438_v49  ;;  %v1440_v54 = vmul.f32 -1.442695, %v606_v53  ;;  %v608_v55 = vpop.f32.mrb[7].mxu0  ;;  %v849_v63 = vpop.f32.mrb[5].mxu1 }
 0x1fd   : > { %1765 = vpow2.f32 %v1439_v52  ;;  %v1441_v56 = vmul.f32 -1.442695, %v608_v55  ;;  %v851_v2 = vpop.f32.mrb[6].mxu1 }
 0x1fe   : > { %v1756_v57 = vpop.eup %1755  ;;  %1767 = vpow2.f32 %v1440_v54  ;;  %v853_v4 = vpop.f32.mrb[7].mxu1  ;;  %v929_v54 = vld [vmem:[#allocation2 + $0x28] sm:$0xff] }
 0x1ff   : > { %v1758_v58 = vpop.eup %1757  ;;  %v880_v59 = vadd.f32 1.0, %v1756_v57  ;;  %1769 = vpow2.f32 %v1441_v56  ;;  %v930_v56 = vld [vmem:[#allocation2 + $0x30] sm:$0xff] }
 0x200   : > { %v1760_v61 = vpop.eup %1759  ;;  %v881_v62 = vadd.f32 1.0, %v1758_v58 }
 0x201   : > { %v1762_v0 = vpop.eup %1761  ;;  %1771 = vrcp.f32 %v880_v59  ;;  %v882_v1 = vadd.f32 1.0, %v1760_v61  ;;  %v931_v59 = vld [vmem:[#allocation2 + $0x38] sm:$0xff] }
 0x202   : > { %1773 = vrcp.f32 %v881_v62  ;;  %v883_v3 = vadd.f32 1.0, %v1762_v0 }
 0x203   : > { %1775 = vrcp.f32 %v882_v1 }
 0x204   : > { %1777 = vrcp.f32 %v883_v3 }
 0x206   : > { %v1764_v5 = vpop.eup %1763 }
 0x207   : > { %v1766_v6 = vpop.eup %1765  ;;  %v884_v7 = vadd.f32 1.0, %v1764_v5 }
 0x208   : > { %v1768_v8 = vpop.eup %1767  ;;  %v885_v9 = vadd.f32 1.0, %v1766_v6 }
 0x209   : > { %v1770_v10 = vpop.eup %1769  ;;  %1779 = vrcp.f32 %v884_v7  ;;  %v886_v11 = vadd.f32 1.0, %v1768_v8 }
 0x20a   : > { %1781 = vrcp.f32 %v885_v9  ;;  %v887_v12 = vadd.f32 1.0, %v1770_v10 }
 0x20b   : > { %v1772_v13 = vpop.eup %1771  ;;  %1783 = vrcp.f32 %v886_v11 }
 0x20c   : > { %v1774_v14 = vpop.eup %1773  ;;  %v904_v15 = vmul.f32 %v1772_v13, %v592_v37  ;;  %1785 = vrcp.f32 %v887_v12 }
 0x20d   : > { %v1776_v16 = vpop.eup %1775  ;;  %v905_v17 = vmul.f32 %v1774_v14, %v594_v39 }
 0x20e   : > { %v1778_v18 = vpop.eup %1777  ;;  %v906_v19 = vmul.f32 %v1776_v16, %v596_v41  ;;  %v912_v20 = vmul.f32 %v904_v15, %v837_v45  ;;  %v924_v41 = vld [vmem:[#allocation2] sm:$0xff] }
 0x20f   : > { %v907_v21 = vmul.f32 %v1778_v18, %v598_v43  ;;  %v913_v22 = vmul.f32 %v905_v17, %v839_v46 }
 0x210   : > { %v914_v23 = vmul.f32 %v906_v19, %v841_v48 }
 0x211   : > { %v915_v24 = vmul.f32 %v907_v21, %v843_v51 }
 0x212   : > { %v920_v25 = vpack.c.bf16 %v914_v23, %v912_v20 }
 0x213   : > { %v1780_v26 = vpop.eup %1779  ;;  %v921_v27 = vpack.c.bf16 %v915_v24, %v913_v22 }
 0x214   : > { %v1782_v28 = vpop.eup %1781  ;;  %v908_v29 = vmul.f32 %v1780_v26, %v602_v47  ;;  %v927_v47 = vld [vmem:[#allocation2 + $0x18] sm:$0xff] }
 0x215   : > { %v1784_v30 = vpop.eup %1783  ;;  %v909_v31 = vmul.f32 %v1782_v28, %v604_v50  ;;  %1156 = vmatprep.mubr.bf16.mxu0 %v921_v27 }
 0x216   : > { %v1786_v32 = vpop.eup %1785  ;;  %v910_v33 = vmul.f32 %v1784_v30, %v606_v53  ;;  %v916_v34 = vmul.f32 %v908_v29, %v847_v60  ;;  %1157 = vmatmul.mubr.bf16.vlgmr.msra.gmra.mrb[8].mxu0 %v920_v25  ;;  %v928_v53 = vld [vmem:[#allocation2 + $0x20] sm:$0xff] }
 0x217   : > { %v911_v35 = vmul.f32 %v1786_v32, %v608_v55  ;;  %v917_v36 = vmul.f32 %v909_v31, %v849_v63 }
 0x218   : > { %v918_v37 = vmul.f32 %v910_v33, %v851_v2 }
 0x219   : > { %v919_v38 = vmul.f32 %v911_v35, %v853_v4 }
 0x21a   : > { %v922_v39 = vpack.c.bf16 %v918_v37, %v916_v34 }
 0x21b   : > { %v923_v40 = vpack.c.bf16 %v919_v38, %v917_v36 }
 0x21d   : > { %1166 = vmatprep.mubr.bf16.mxu1 %v923_v40 }
 0x21e   : > { %1167 = vmatmul.mubr.bf16.vlgmr.msra.gmra.mrb[8].mxu1 %v922_v39 }
 0x2e9   : > { %v1158_v43 = vpop.f32.mrb[8].mxu0 }
 0x2ea   : > { %v1177_v45 = vadd.f32 %v1158_v43, %v924_v41  ;;  %v1160_v46 = vpop.f32.mrb[9].mxu0 }
 0x2eb   : > { %v1178_v48 = vadd.f32 %v1160_v46, %v925_v42  ;;  %v1162_v49 = vpop.f32.mrb[10].mxu0 }
 0x2ec   : > { %1185 = vst [vmem:[#allocation2] sm:$0xff] %v1177_v45  ;;  %v1179_v50 = vadd.f32 %v1162_v49, %v926_v44  ;;  %v1164_v51 = vpop.f32.mrb[11].mxu0 }
 0x2ed   : > { %1186 = vst [vmem:[#allocation2 + $0x8] sm:$0xff] %v1178_v48  ;;  %v1180_v52 = vadd.f32 %v1164_v51, %v927_v47 }
 0x2ee   : > { %1187 = vst [vmem:[#allocation2 + $0x10] sm:$0xff] %v1179_v50 }
 0x2ef   : > { %1188 = vst [vmem:[#allocation2 + $0x18] sm:$0xff] %v1180_v52 }
 0x2f1   : > { %v1168_v55 = vpop.f32.mrb[8].mxu1  ;;  %1196 = sbr.rel (%p1474_p4) target bundleno = 768 (0x300), region = 60 }
 0x2f2   : > { %v1181_v57 = vadd.f32 %v1168_v55, %v928_v53  ;;  %v1170_v58 = vpop.f32.mrb[9].mxu1 }
 0x2f3   : > { %v1182_v60 = vadd.f32 %v1170_v58, %v929_v54  ;;  %v1172_v61 = vpop.f32.mrb[10].mxu1  ;;  %v1197_v1 = vld [vmem:[#allocation2] sm:$0xff] (!%p1474_p4) }
 0x2f4   : > { %1189 = vst [vmem:[#allocation2 + $0x20] sm:$0xff] %v1181_v57  ;;  %v1183_v62 = vadd.f32 %v1172_v61, %v930_v56  ;;  %v1174_v63 = vpop.f32.mrb[11].mxu1  ;;  %v1198_v2 = vld [vmem:[#allocation2 + $0x8] sm:$0xff] (!%p1474_p4)  ;;  %1205 = vst [vmem:[#allocation11] sm:$0xff] (!%p1474_p4), %v1197_v1 }
 0x2f5   : > { %1190 = vst [vmem:[#allocation2 + $0x28] sm:$0xff] %v1182_v60  ;;  %v1184_v0 = vadd.f32 %v1174_v63, %v931_v59  ;;  %v1199_v3 = vld [vmem:[#allocation2 + $0x10] sm:$0xff] (!%p1474_p4)  ;;  %1206 = vst [vmem:[#allocation11 + $0x8] sm:$0xff] (!%p1474_p4), %v1198_v2 }
 0x2f6   : > { %1191 = vst [vmem:[#allocation2 + $0x30] sm:$0xff] %v1183_v62  ;;  %1207 = vst [vmem:[#allocation11 + $0x10] sm:$0xff] (!%p1474_p4), %v1199_v3  ;;  %v1200_v4 = vld [vmem:[#allocation2 + $0x18] sm:$0xff] (!%p1474_p4) }
 0x2f7   : > { %1192 = vst [vmem:[#allocation2 + $0x38] sm:$0xff] %v1184_v0  ;;  %1208 = vst [vmem:[#allocation11 + $0x18] sm:$0xff] (!%p1474_p4), %v1200_v4 }
 0x2fb   : > { %v1201_v5 = vld [vmem:[#allocation2 + $0x20] sm:$0xff] }
 0x2fc   : > { %v1202_v6 = vld [vmem:[#allocation2 + $0x28] sm:$0xff]  ;;  %1209 = vst [vmem:[#allocation11 + $0x20] sm:$0xff] %v1201_v5 }
 0x2fd   : > { %1210 = vst [vmem:[#allocation11 + $0x28] sm:$0xff] %v1202_v6  ;;  %v1203_v7 = vld [vmem:[#allocation2 + $0x30] sm:$0xff] }
 0x2fe   : > { %v1204_v8 = vld [vmem:[#allocation2 + $0x38] sm:$0xff]  ;;  %1211 = vst [vmem:[#allocation11 + $0x30] sm:$0xff] %v1203_v7 }
 0x2ff   : > { %1212 = vst [vmem:[#allocation11 + $0x38] sm:$0xff] %v1204_v8 }
 0x300 PF: > { %p1548_p7 = scmp.eq.s32.totalorder %s2135_s14, 3  ;;  %s2002_s18 = smov [#allocation11]  }
 0x301   : > { %s1223_s22 = sshll.u32 %s2002_s18, 4  ;;  %s1224_s22 = int_to_ptr.vmem [resolvable:$true] %s1223_s22 }
 0x302   : > { %s1905_s6 = scalar_lea.vmem %s1224_s22, 1024  ;;  %p1912_p6 = scmp.lt.s32.totalorder %s1224_s22, %s1224_s22 }
 0x303   : > { %p1906_p9 = scmp.ne.s32.totalorder %s1224_s22, %s1905_s6  ;;  %p1913_p13 = scmp.lt.s32.totalorder %s1905_s6, %s1905_s6 }
 0x305   : > { %p1907_p12 = pnand %p1906_p9, %p1548_p7  ;;  %p1914_p3 = por %p1913_p13, %p1912_p6 }
 0x307   : > { %p1908_p10 = pneg %p1907_p12 }
 0x309   : > { %p1915_p2 = pnand %p1914_p3, %p1908_p10 }
 0x30b   : > { %1918 = shalt.err (!%p1915_p2)
}
 0x30c   : > { %s1919_s10 = scalar_lea.hbm %s2423_s4, 1024 }
 0x30d   : > { %p1920_p8 = scmp.ne.s32.totalorder %s2423_s4, %s1919_s10  ;;  %p1925_p0 = scmp.lt.u32.totalorder %s1919_s10, %s2423_s4 }
 0x30f   : > { %p1921_p5 = pnand %p1920_p8, %p1548_p7 }
 0x311   : > { %p1922_p11 = pneg %p1921_p5 }
 0x313   : > { %p1927_p1 = pnand %p1925_p0, %p1922_p11 }
 0x315   : > { %1930 = shalt.err (!%p1927_p1)
}
 0x316   : > { %s2003_s25 = smov 256   ;;  %s2004_s5 = smov 16  }
 0x317   : > { %1528 = dma.vmem_to_hbm [thread:$0]  (%p1548_p7), %s1224_s22, 1024, %s2423_s4, [#allocation5], %s2003_s25, %s2003_s25, %s2004_s5  }
 0x318   : > { %1968 = dma.done.wait (%p1548_p7), [#allocation5], 1024  }
 0x319   : > { %1970 = vsyncadd (%p1548_p7), [#allocation5], 4294966272 }
 0x31a PF: > { %s22_s20 = sadd.s32 1, %s1993_s20   ;;  %s2456_s15 = smov %s1977_s16 }
 0x31b   : > { %p19_p4 = scmp.ge.s32.totalorder %s22_s20, 6   ;;  %s2457_s16 = smov %s1981_s17 }
 0x31c   : > { %s2458_s17 = smov %s2077_s27  ;;  %s2459_s18 = smov %s1989_s19 }
 0x31d   : > { %s2460_s19 = smov %s2462_s21  ;;  %21 = sbr.rel (!%p19_p4) target bundleno = 11 (0xb), region = 112 }
 0x324   :  { %1239 = vsyncpa [#allocation4], 1 }
 0x325   :  { %1241 = vsyncpa [#allocation4 + $0x1], 1 }
 0x326   :  { %1242 = vsyncpa [#allocation7], 1 }
 0x327   :  { %1244 = vsyncpa [#allocation7 + $0x1], 1 }
 0x328   :  { %1245 = vsyncpa [#allocation10], 1 }
 0x329   :  { %1247 = vsyncpa [#allocation10 + $0x1], 1 }
 0x32a   :  { %1248 = vsyncpa [#allocation5], 1 }
 0x32b   :  { %1250 = vsyncpa [#allocation5 + $0x1], 1 }

</bundles_post_ra>
